<compile_context>
chip_gen: v6e
topology: v6e:2x2x1
jax: 0.10.0
libtpu: 0.0.40
codegen_flags: <defaults>
</compile_context>

<pallas_src>
import jax
import jax.numpy as jnp
from jax.experimental import pallas as pl
from jax.experimental.pallas import tpu as pltpu


# Max time tile (lanes). >=512 lanes reaches ~85% of HBM roofline; 1024 chosen
# from the 512/1024/2048 sweep range as a good overhead/VMEM compromise.
_TILE_T_MAX = 1024

# Use the VPU broadcast-FMA path for the in_block when C_in is this small.
_VPU_IN_BLOCK_MAX_CIN = 8


# ----------------------------- Pallas kernel ------------------------------ #

def _make_mlp_kernel(c_in: int, vpu_in_block: bool):
    """Builds the (C, T_tile)-oriented kernel (channels=sublanes, time=lanes)."""

    def mlp_kernel(x_ref,
                   w_in_ref, b_in_ref,
                   w1a_ref, b1a_ref, w2a_ref, b2a_ref,
                   w1b_ref, b1b_ref, w2b_ref, b2b_ref,
                   w_out_ref, b_out_ref,
                   o_ref):
        # x_ref : (C_in, T_tile)  f32
        # w_*   : (C_out, C_in)   bf16 (weight-norm pre-folded)
        # b_*   : (C_out, 1)      f32
        # o_ref : (C_out, T_tile) f32

        def lin(h_bf16, w_ref, b_ref):
            # bf16 x bf16 -> f32 accumulate on the MXU; bias add stays f32 (VPU).
            return jnp.dot(w_ref[...], h_bf16,
                           preferred_element_type=jnp.float32) + b_ref[...]

        def relu_bf16(h_f32):
            # Single fused ReLU + downcast per MXU operand; the f32 residual
            # stream itself is never narrowed.
            return jnp.maximum(h_f32, 0.0).astype(jnp.bfloat16)

        def resblock(h, w1, b1, w2, b2):
            # ResBlockLinear with in_channels == out_channels => bridge = Identity.
            y = lin(relu_bf16(h), w1, b1)
            y = lin(relu_bf16(y), w2, b2)
            return h + y

        x = x_ref[...]
        if vpu_in_block:
            # in_block: C_in is tiny, so an MXU pass would be >90% zero padding.
            # Do C_in broadcast-FMAs on the VPU instead (and skip the bf16 cast
            # of x entirely).
            w_in = w_in_ref[...].astype(jnp.float32)              # (BF, C_in), tiny
            h = b_in_ref[...] + w_in[:, 0:1] * x[0:1, :]
            for c in range(1, c_in):
                h = h + w_in[:, c:c + 1] * x[c:c + 1, :]
        else:
            h = lin(x.astype(jnp.bfloat16), w_in_ref, b_in_ref)   # in_block on MXU

        h = resblock(h, w1a_ref, b1a_ref, w2a_ref, b2a_ref)       # mid_block[0]
        h = resblock(h, w1b_ref, b1b_ref, w2b_ref, b2b_ref)       # mid_block[1]
        # out_block: ReLU -> conv
        o_ref[...] = lin(relu_bf16(h), w_out_ref, b_out_ref).astype(o_ref.dtype)

    return mlp_kernel


# ------------------------------ JAX wrapper -------------------------------- #

def _weight_norm(v, g):
    """Effective Conv1d(k=1) weight from weight_norm params.

    v: (out, in), g: (out,).  weight = g * v / ||v||_2 (norm over non-0 dims).
    """
    norm = jnp.sqrt(jnp.sum(v * v, axis=1, keepdims=True))
    norm = jnp.maximum(norm, 1e-12)   # guard against all-zero rows
    return g[:, None] * v / norm


def init_params(key, in_channels, out_channels, base_filters, n_blocks=2):
    assert n_blocks == 2, "kernel is specialized to n_blocks=2"
    dims = [
        (in_channels, base_filters),      # in_block conv
        (base_filters, base_filters),     # block0 conv1
        (base_filters, base_filters),     # block0 conv2
        (base_filters, base_filters),     # block1 conv1
        (base_filters, base_filters),     # block1 conv2
        (base_filters, out_channels),     # out_block conv
    ]
    params = []
    for (cin, cout) in dims:
        key, kv, kg, kb = jax.random.split(key, 4)
        v = jax.random.normal(kv, (cout, cin), jnp.float32) * 0.1
        g = 1.0 + 0.05 * jax.random.normal(kg, (cout,), jnp.float32)
        b = 0.01 * jax.random.normal(kb, (cout,), jnp.float32)
        w = _weight_norm(v, g)                           # (cout, cin)
        params.append((w.astype(jnp.bfloat16),           # bf16 MXU operand
                       b[:, None].astype(jnp.float32)))  # (cout, 1) f32 bias
    return tuple(params)


def _round_up(n, m):
    return ((n + m - 1) // m) * m


@jax.jit
def mlp_forward(x, params):
    """x: (B, C_in, T) float32  ->  (B, C_out, T) float32 (NCT, no transposes)."""
    B, C_in, T = x.shape
    (w_in, b_in), (w1a, b1a), (w2a, b2a), (w1b, b1b), (w2b, b2b), (w_out, b_out) = params
    BF = w_in.shape[0]
    C_out = w_out.shape[0]

    # Time tile: lane-dense (multiple of 128), as large as useful to amortize
    # per-grid-step overhead and keep the DMA streams near HBM roofline.
    tile_t = min(_TILE_T_MAX, _round_up(T, 128))
    if B == 1:
        # v7x megacore: keep >= 2 grid steps so both TensorCores get work.
        tile_t = min(tile_t, max(128, _round_up(pl.cdiv(T, 2), 128)))
    grid = (B, pl.cdiv(T, tile_t))

    def stream_spec(c):
        # Batch dim squeezed; (c, tile_t) block streams through VMEM. The
        # partial last time block is masked by Pallas — no wrapper-side
        # jnp.pad / slice HBM round-trips.
        return pl.BlockSpec((None, c, tile_t), lambda b, t: (b, 0, t))

    def resident_spec(arr):
        # Whole weight/bias stays VMEM-resident across all grid steps
        # (constant index_map => fetched once).
        return pl.BlockSpec(arr.shape, lambda b, t: (0, 0))

    weights = [w_in, b_in, w1a, b1a, w2a, b2a, w1b, b1b, w2b, b2b, w_out, b_out]
    in_specs = [stream_spec(C_in)] + [resident_spec(a) for a in weights]

    vpu_in_block = C_in <= _VPU_IN_BLOCK_MAX_CIN
    kernel = _make_mlp_kernel(C_in, vpu_in_block)

    # Advisory cost estimate for XLA's scheduler.
    flops = 2 * B * T * (C_in * BF + 4 * BF * BF + BF * C_out)
    weight_bytes = int(sum(a.size * a.dtype.itemsize for a in weights))
    bytes_accessed = x.size * x.dtype.itemsize + B * C_out * T * 4 + weight_bytes

    # Explicit VMEM budget: double-buffered x/out tiles + (double-buffered)
    # resident weights + live f32 intermediate chain + headroom for compiler
    # temporaries. Clamped comfortably under v7x's 64 MiB physical VMEM; the
    # same budget fits trivially in v5e/v6e's 128 MiB.
    tile_io_bytes = 2 * tile_t * (C_in * x.dtype.itemsize + C_out * 4)
    interm_bytes = 4 * BF * tile_t * 4
    vmem_limit = int(min(max(tile_io_bytes + 2 * weight_bytes + interm_bytes
                             + (12 << 20), 16 << 20), 56 << 20))

    return pl.pallas_call(
        kernel,
        out_shape=jax.ShapeDtypeStruct((B, C_out, T), jnp.float32),
        grid=grid,
        in_specs=in_specs,
        out_specs=stream_spec(C_out),
        compiler_params=pltpu.CompilerParams(
            dimension_semantics=("parallel", "parallel"),
            vmem_limit_bytes=vmem_limit),
        cost_estimate=pl.CostEstimate(flops=flops, transcendentals=0,
                                      bytes_accessed=bytes_accessed),
    )(x, *weights)


# Pure-JAX reference reproducing the kernel's mixed-precision math exactly.
def mlp_reference(x, params):
    (w_in, b_in), (w1a, b1a), (w2a, b2a), (w1b, b1b), (w2b, b2b), (w_out, b_out) = params
    C_in = x.shape[1]

    def lin(h_bf16, w, b):
        return jnp.einsum('oc,bct->bot', w, h_bf16,
                          preferred_element_type=jnp.float32) + b[None]

    def relu_bf16(h):
        return jnp.maximum(h, 0.0).astype(jnp.bfloat16)

    if C_in <= _VPU_IN_BLOCK_MAX_CIN:
        h = jnp.einsum('oc,bct->bot', w_in.astype(jnp.float32), x,
                       preferred_element_type=jnp.float32) + b_in[None]
    else:
        h = lin(x.astype(jnp.bfloat16), w_in, b_in)
    for (w1, b1, w2, b2) in [(w1a, b1a, w2a, b2a), (w1b, b1b, w2b, b2b)]:
        y = lin(relu_bf16(h), w1, b1)
        y = lin(relu_bf16(y), w2, b2)
        h = h + y
    return lin(relu_bf16(h), w_out, b_out)


if __name__ == "__main__":
    key = jax.random.PRNGKey(0)
    # Small shapes; T=16 (not a multiple of 128) exercises the masked partial
    # last time block now that the wrapper-side pad/slice is gone.
    B, C_in, C_out, BF, T = 2, 4, 8, 32, 16

    key, kx, kp = jax.random.split(key, 3)
    x = jax.random.normal(kx, (B, C_in, T), jnp.float32)
    params = init_params(kp, C_in, C_out, BF, n_blocks=2)

    out = mlp_forward(x, params)
    jax.block_until_ready(out)

    ref = mlp_reference(x, params)
    assert out.shape == (B, C_out, T), out.shape
    err = float(jnp.max(jnp.abs(out - ref)))
    assert err < 5e-3, err

    print("KERNEL_OK")
</pallas_src>

<mosaic_0001>
module attributes {stable_mosaic.version = 11 : i64} {
  func.func @mlp_kernel(%arg0: i32, %arg1: i32, %arg2: memref<1x4x128xf32, #tpu.memory_space<vmem>>, %arg3: memref<32x4xbf16, #tpu.memory_space<vmem>>, %arg4: memref<32x1xf32, #tpu.memory_space<vmem>>, %arg5: memref<32x32xbf16, #tpu.memory_space<vmem>>, %arg6: memref<32x1xf32, #tpu.memory_space<vmem>>, %arg7: memref<32x32xbf16, #tpu.memory_space<vmem>>, %arg8: memref<32x1xf32, #tpu.memory_space<vmem>>, %arg9: memref<32x32xbf16, #tpu.memory_space<vmem>>, %arg10: memref<32x1xf32, #tpu.memory_space<vmem>>, %arg11: memref<32x32xbf16, #tpu.memory_space<vmem>>, %arg12: memref<32x1xf32, #tpu.memory_space<vmem>>, %arg13: memref<8x32xbf16, #tpu.memory_space<vmem>>, %arg14: memref<8x1xf32, #tpu.memory_space<vmem>>, %arg15: memref<1x8x128xf32, #tpu.memory_space<vmem>>) attributes {dimension_semantics = [#tpu.dimension_semantics<parallel>, #tpu.dimension_semantics<parallel>], iteration_bounds = array<i64: 2, 1>, scalar_prefetch = 0 : i64, scratch_operands = 0 : i64, tpu.core_type = #tpu.core_type<tc>, window_params = [{transform_indices = @transform_0, window_bounds = array<i64: 1, 4, 128>}, {pipeline_mode = #tpu.pipeline_mode<synchronous>, transform_indices = @transform_1, window_bounds = array<i64: 32, 4>}, {pipeline_mode = #tpu.pipeline_mode<synchronous>, transform_indices = @transform_2, window_bounds = array<i64: 32, 1>}, {pipeline_mode = #tpu.pipeline_mode<synchronous>, transform_indices = @transform_3, window_bounds = array<i64: 32, 32>}, {pipeline_mode = #tpu.pipeline_mode<synchronous>, transform_indices = @transform_4, window_bounds = array<i64: 32, 1>}, {pipeline_mode = #tpu.pipeline_mode<synchronous>, transform_indices = @transform_5, window_bounds = array<i64: 32, 32>}, {pipeline_mode = #tpu.pipeline_mode<synchronous>, transform_indices = @transform_6, window_bounds = array<i64: 32, 1>}, {pipeline_mode = #tpu.pipeline_mode<synchronous>, transform_indices = @transform_7, window_bounds = array<i64: 32, 32>}, {pipeline_mode = #tpu.pipeline_mode<synchronous>, transform_indices = @transform_8, window_bounds = array<i64: 32, 1>}, {pipeline_mode = #tpu.pipeline_mode<synchronous>, transform_indices = @transform_9, window_bounds = array<i64: 32, 32>}, {pipeline_mode = #tpu.pipeline_mode<synchronous>, transform_indices = @transform_10, window_bounds = array<i64: 32, 1>}, {pipeline_mode = #tpu.pipeline_mode<synchronous>, transform_indices = @transform_11, window_bounds = array<i64: 8, 32>}, {pipeline_mode = #tpu.pipeline_mode<synchronous>, transform_indices = @transform_12, window_bounds = array<i64: 8, 1>}, {transform_indices = @transform_13, window_bounds = array<i64: 1, 8, 128>}]} {
    %c0 = arith.constant 0 : index
    %c0_0 = arith.constant 0 : index
    %c0_1 = arith.constant 0 : index
    %0 = vector.load %arg2[%c0, %c0_0, %c0_1] : memref<1x4x128xf32, #tpu.memory_space<vmem>>, vector<1x4x128xf32>
    %1 = vector.shape_cast %0 : vector<1x4x128xf32> to vector<4x128xf32>
    %c0_2 = arith.constant 0 : index
    %c0_3 = arith.constant 0 : index
    %2 = vector.load %arg3[%c0_2, %c0_3] : memref<32x4xbf16, #tpu.memory_space<vmem>>, vector<32x4xbf16>
    %3 = arith.extf %2 : vector<32x4xbf16> to vector<32x4xf32>
    %c0_4 = arith.constant 0 : index
    %c0_5 = arith.constant 0 : index
    %4 = vector.load %arg4[%c0_4, %c0_5] : memref<32x1xf32, #tpu.memory_space<vmem>>, vector<32x1xf32>
    %5 = vector.extract_strided_slice %3 {offsets = [0, 0], sizes = [32, 1], strides = [1, 1]} : vector<32x4xf32> to vector<32x1xf32>
    %6 = vector.extract_strided_slice %1 {offsets = [0, 0], sizes = [1, 128], strides = [1, 1]} : vector<4x128xf32> to vector<1x128xf32>
    %7 = vector.broadcast %5 : vector<32x1xf32> to vector<32x128xf32>
    %8 = vector.broadcast %6 : vector<1x128xf32> to vector<32x128xf32>
    %9 = arith.mulf %7, %8 : vector<32x128xf32>
    %10 = vector.broadcast %4 : vector<32x1xf32> to vector<32x128xf32>
    %11 = arith.addf %10, %9 : vector<32x128xf32>
    %12 = vector.extract_strided_slice %3 {offsets = [0, 1], sizes = [32, 1], strides = [1, 1]} : vector<32x4xf32> to vector<32x1xf32>
    %13 = vector.extract_strided_slice %1 {offsets = [1, 0], sizes = [1, 128], strides = [1, 1]} : vector<4x128xf32> to vector<1x128xf32>
    %14 = vector.broadcast %12 : vector<32x1xf32> to vector<32x128xf32>
    %15 = vector.broadcast %13 : vector<1x128xf32> to vector<32x128xf32>
    %16 = arith.mulf %14, %15 : vector<32x128xf32>
    %17 = arith.addf %11, %16 : vector<32x128xf32>
    %18 = vector.extract_strided_slice %3 {offsets = [0, 2], sizes = [32, 1], strides = [1, 1]} : vector<32x4xf32> to vector<32x1xf32>
    %19 = vector.extract_strided_slice %1 {offsets = [2, 0], sizes = [1, 128], strides = [1, 1]} : vector<4x128xf32> to vector<1x128xf32>
    %20 = vector.broadcast %18 : vector<32x1xf32> to vector<32x128xf32>
    %21 = vector.broadcast %19 : vector<1x128xf32> to vector<32x128xf32>
    %22 = arith.mulf %20, %21 : vector<32x128xf32>
    %23 = arith.addf %17, %22 : vector<32x128xf32>
    %24 = vector.extract_strided_slice %3 {offsets = [0, 3], sizes = [32, 1], strides = [1, 1]} : vector<32x4xf32> to vector<32x1xf32>
    %25 = vector.extract_strided_slice %1 {offsets = [3, 0], sizes = [1, 128], strides = [1, 1]} : vector<4x128xf32> to vector<1x128xf32>
    %26 = vector.broadcast %24 : vector<32x1xf32> to vector<32x128xf32>
    %27 = vector.broadcast %25 : vector<1x128xf32> to vector<32x128xf32>
    %28 = arith.mulf %26, %27 : vector<32x128xf32>
    %29 = arith.addf %23, %28 : vector<32x128xf32>
    %cst = arith.constant 0.000000e+00 : f32
    %30 = vector.broadcast %cst : f32 to vector<32x128xf32>
    %31 = arith.maximumf %29, %30 : vector<32x128xf32>
    %32 = arith.truncf %31 : vector<32x128xf32> to vector<32x128xbf16>
    %c0_6 = arith.constant 0 : index
    %c0_7 = arith.constant 0 : index
    %33 = vector.load %arg5[%c0_6, %c0_7] : memref<32x32xbf16, #tpu.memory_space<vmem>>, vector<32x32xbf16>
    %cst_8 = arith.constant dense<0.000000e+00> : vector<32x128xf32>
    %34 = tpu.matmul %33, %32, %cst_8 {dimension_numbers = #tpu.dot_dimension_numbers<[1], [0], [0], [1], [0, 0, 1, 1], [], []>} : vector<32x32xbf16>, vector<32x128xbf16>, vector<32x128xf32> -> vector<32x128xf32>
    %c0_9 = arith.constant 0 : index
    %c0_10 = arith.constant 0 : index
    %35 = vector.load %arg6[%c0_9, %c0_10] : memref<32x1xf32, #tpu.memory_space<vmem>>, vector<32x1xf32>
    %36 = vector.broadcast %35 : vector<32x1xf32> to vector<32x128xf32>
    %37 = arith.addf %34, %36 : vector<32x128xf32>
    %cst_11 = arith.constant 0.000000e+00 : f32
    %38 = vector.broadcast %cst_11 : f32 to vector<32x128xf32>
    %39 = arith.maximumf %37, %38 : vector<32x128xf32>
    %40 = arith.truncf %39 : vector<32x128xf32> to vector<32x128xbf16>
    %c0_12 = arith.constant 0 : index
    %c0_13 = arith.constant 0 : index
    %41 = vector.load %arg7[%c0_12, %c0_13] : memref<32x32xbf16, #tpu.memory_space<vmem>>, vector<32x32xbf16>
    %cst_14 = arith.constant dense<0.000000e+00> : vector<32x128xf32>
    %42 = tpu.matmul %41, %40, %cst_14 {dimension_numbers = #tpu.dot_dimension_numbers<[1], [0], [0], [1], [0, 0, 1, 1], [], []>} : vector<32x32xbf16>, vector<32x128xbf16>, vector<32x128xf32> -> vector<32x128xf32>
    %c0_15 = arith.constant 0 : index
    %c0_16 = arith.constant 0 : index
    %43 = vector.load %arg8[%c0_15, %c0_16] : memref<32x1xf32, #tpu.memory_space<vmem>>, vector<32x1xf32>
    %44 = vector.broadcast %43 : vector<32x1xf32> to vector<32x128xf32>
    %45 = arith.addf %42, %44 : vector<32x128xf32>
    %46 = arith.addf %29, %45 : vector<32x128xf32>
    %cst_17 = arith.constant 0.000000e+00 : f32
    %47 = vector.broadcast %cst_17 : f32 to vector<32x128xf32>
    %48 = arith.maximumf %46, %47 : vector<32x128xf32>
    %49 = arith.truncf %48 : vector<32x128xf32> to vector<32x128xbf16>
    %c0_18 = arith.constant 0 : index
    %c0_19 = arith.constant 0 : index
    %50 = vector.load %arg9[%c0_18, %c0_19] : memref<32x32xbf16, #tpu.memory_space<vmem>>, vector<32x32xbf16>
    %cst_20 = arith.constant dense<0.000000e+00> : vector<32x128xf32>
    %51 = tpu.matmul %50, %49, %cst_20 {dimension_numbers = #tpu.dot_dimension_numbers<[1], [0], [0], [1], [0, 0, 1, 1], [], []>} : vector<32x32xbf16>, vector<32x128xbf16>, vector<32x128xf32> -> vector<32x128xf32>
    %c0_21 = arith.constant 0 : index
    %c0_22 = arith.constant 0 : index
    %52 = vector.load %arg10[%c0_21, %c0_22] : memref<32x1xf32, #tpu.memory_space<vmem>>, vector<32x1xf32>
    %53 = vector.broadcast %52 : vector<32x1xf32> to vector<32x128xf32>
    %54 = arith.addf %51, %53 : vector<32x128xf32>
    %cst_23 = arith.constant 0.000000e+00 : f32
    %55 = vector.broadcast %cst_23 : f32 to vector<32x128xf32>
    %56 = arith.maximumf %54, %55 : vector<32x128xf32>
    %57 = arith.truncf %56 : vector<32x128xf32> to vector<32x128xbf16>
    %c0_24 = arith.constant 0 : index
    %c0_25 = arith.constant 0 : index
    %58 = vector.load %arg11[%c0_24, %c0_25] : memref<32x32xbf16, #tpu.memory_space<vmem>>, vector<32x32xbf16>
    %cst_26 = arith.constant dense<0.000000e+00> : vector<32x128xf32>
    %59 = tpu.matmul %58, %57, %cst_26 {dimension_numbers = #tpu.dot_dimension_numbers<[1], [0], [0], [1], [0, 0, 1, 1], [], []>} : vector<32x32xbf16>, vector<32x128xbf16>, vector<32x128xf32> -> vector<32x128xf32>
    %c0_27 = arith.constant 0 : index
    %c0_28 = arith.constant 0 : index
    %60 = vector.load %arg12[%c0_27, %c0_28] : memref<32x1xf32, #tpu.memory_space<vmem>>, vector<32x1xf32>
    %61 = vector.broadcast %60 : vector<32x1xf32> to vector<32x128xf32>
    %62 = arith.addf %59, %61 : vector<32x128xf32>
    %63 = arith.addf %46, %62 : vector<32x128xf32>
    %cst_29 = arith.constant 0.000000e+00 : f32
    %64 = vector.broadcast %cst_29 : f32 to vector<32x128xf32>
    %65 = arith.maximumf %63, %64 : vector<32x128xf32>
    %66 = arith.truncf %65 : vector<32x128xf32> to vector<32x128xbf16>
    %c0_30 = arith.constant 0 : index
    %c0_31 = arith.constant 0 : index
    %67 = vector.load %arg13[%c0_30, %c0_31] : memref<8x32xbf16, #tpu.memory_space<vmem>>, vector<8x32xbf16>
    %cst_32 = arith.constant dense<0.000000e+00> : vector<8x128xf32>
    %68 = tpu.matmul %67, %66, %cst_32 {dimension_numbers = #tpu.dot_dimension_numbers<[1], [0], [0], [1], [0, 0, 1, 1], [], []>} : vector<8x32xbf16>, vector<32x128xbf16>, vector<8x128xf32> -> vector<8x128xf32>
    %c0_33 = arith.constant 0 : index
    %c0_34 = arith.constant 0 : index
    %69 = vector.load %arg14[%c0_33, %c0_34] : memref<8x1xf32, #tpu.memory_space<vmem>>, vector<8x1xf32>
    %70 = vector.broadcast %69 : vector<8x1xf32> to vector<8x128xf32>
    %71 = arith.addf %68, %70 : vector<8x128xf32>
    %c0_35 = arith.constant 0 : index
    %c0_36 = arith.constant 0 : index
    %c0_37 = arith.constant 0 : index
    %72 = vector.load %arg15[%c0_35, %c0_36, %c0_37] : memref<1x8x128xf32, #tpu.memory_space<vmem>>, vector<1x8x128xf32>
    %73 = vector.shape_cast %72 : vector<1x8x128xf32> to vector<8x128xf32>
    %74 = vector.shape_cast %71 : vector<8x128xf32> to vector<1x8x128xf32>
    tpu.vector_store %arg15[%c0_35, %c0_36, %c0_37], %74 {strides = array<i32>} : memref<1x8x128xf32, #tpu.memory_space<vmem>>, vector<1x8x128xf32>,
    return
  }
  func.func @transform_0(%arg0: i32, %arg1: i32) -> (i32, i32, i32) {
    %c0_i32 = arith.constant 0 : i32
    %c0_i32_0 = arith.constant 0 : i32
    return %arg0, %c0_i32, %arg1 : i32, i32, i32
  }
  func.func @transform_1(%arg0: i32, %arg1: i32) -> (i32, i32) {
    %c0_i32 = arith.constant 0 : i32
    %c0_i32_0 = arith.constant 0 : i32
    %c0_i32_1 = arith.constant 0 : i32
    return %c0_i32, %c0_i32_0 : i32, i32
  }
  func.func @transform_2(%arg0: i32, %arg1: i32) -> (i32, i32) {
    %c0_i32 = arith.constant 0 : i32
    %c0_i32_0 = arith.constant 0 : i32
    %c0_i32_1 = arith.constant 0 : i32
    return %c0_i32, %c0_i32_0 : i32, i32
  }
  func.func @transform_3(%arg0: i32, %arg1: i32) -> (i32, i32) {
    %c0_i32 = arith.constant 0 : i32
    %c0_i32_0 = arith.constant 0 : i32
    %c0_i32_1 = arith.constant 0 : i32
    return %c0_i32, %c0_i32_0 : i32, i32
  }
  func.func @transform_4(%arg0: i32, %arg1: i32) -> (i32, i32) {
    %c0_i32 = arith.constant 0 : i32
    %c0_i32_0 = arith.constant 0 : i32
    %c0_i32_1 = arith.constant 0 : i32
    return %c0_i32, %c0_i32_0 : i32, i32
  }
  func.func @transform_5(%arg0: i32, %arg1: i32) -> (i32, i32) {
    %c0_i32 = arith.constant 0 : i32
    %c0_i32_0 = arith.constant 0 : i32
    %c0_i32_1 = arith.constant 0 : i32
    return %c0_i32, %c0_i32_0 : i32, i32
  }
  func.func @transform_6(%arg0: i32, %arg1: i32) -> (i32, i32) {
    %c0_i32 = arith.constant 0 : i32
    %c0_i32_0 = arith.constant 0 : i32
    %c0_i32_1 = arith.constant 0 : i32
    return %c0_i32, %c0_i32_0 : i32, i32
  }
  func.func @transform_7(%arg0: i32, %arg1: i32) -> (i32, i32) {
    %c0_i32 = arith.constant 0 : i32
    %c0_i32_0 = arith.constant 0 : i32
    %c0_i32_1 = arith.constant 0 : i32
    return %c0_i32, %c0_i32_0 : i32, i32
  }
  func.func @transform_8(%arg0: i32, %arg1: i32) -> (i32, i32) {
    %c0_i32 = arith.constant 0 : i32
    %c0_i32_0 = arith.constant 0 : i32
    %c0_i32_1 = arith.constant 0 : i32
    return %c0_i32, %c0_i32_0 : i32, i32
  }
  func.func @transform_9(%arg0: i32, %arg1: i32) -> (i32, i32) {
    %c0_i32 = arith.constant 0 : i32
    %c0_i32_0 = arith.constant 0 : i32
    %c0_i32_1 = arith.constant 0 : i32
    return %c0_i32, %c0_i32_0 : i32, i32
  }
  func.func @transform_10(%arg0: i32, %arg1: i32) -> (i32, i32) {
    %c0_i32 = arith.constant 0 : i32
    %c0_i32_0 = arith.constant 0 : i32
    %c0_i32_1 = arith.constant 0 : i32
    return %c0_i32, %c0_i32_0 : i32, i32
  }
  func.func @transform_11(%arg0: i32, %arg1: i32) -> (i32, i32) {
    %c0_i32 = arith.constant 0 : i32
    %c0_i32_0 = arith.constant 0 : i32
    %c0_i32_1 = arith.constant 0 : i32
    return %c0_i32, %c0_i32_0 : i32, i32
  }
  func.func @transform_12(%arg0: i32, %arg1: i32) -> (i32, i32) {
    %c0_i32 = arith.constant 0 : i32
    %c0_i32_0 = arith.constant 0 : i32
    %c0_i32_1 = arith.constant 0 : i32
    return %c0_i32, %c0_i32_0 : i32, i32
  }
  func.func @transform_13(%arg0: i32, %arg1: i32) -> (i32, i32, i32) {
    %c0_i32 = arith.constant 0 : i32
    %c0_i32_0 = arith.constant 0 : i32
    return %arg0, %c0_i32, %arg1 : i32, i32, i32
  }
}

</mosaic_0001>

<bundles_post_ra>
// kernel: mlp_forward.1
= control target key start
LH: loop header
LB: loop body
LE: loop exit
PB: predicated region body
PF: predicated region fallthrough
CT: control target
= control target key end

     0   :  { %s1754_s0 = inlined_call_operand.vmem [shape: f32[2,4,16], index: 0, kind: input, shape index: {}]   ;;  %s1755_s1 = inlined_call_operand.vmem [shape: bf16[32,4], index: 1, kind: input, shape index: {}]   ;;  %s1756_s2 = inlined_call_operand.vmem [shape: f32[32,1], index: 2, kind: input, shape index: {}]   ;;  %s1757_s3 = inlined_call_operand.vmem [shape: bf16[32,32], index: 3, kind: input, shape index: {}]   ;;  %s1758_s4 = inlined_call_operand.vmem [shape: f32[32,1], index: 4, kind: input, shape index: {}]   ;;  %s1759_s5 = inlined_call_operand.vmem [shape: bf16[32,32], index: 5, kind: input, shape index: {}]   ;;  %s1760_s6 = inlined_call_operand.vmem [shape: f32[32,1], index: 6, kind: input, shape index: {}]   ;;  %s1761_s7 = inlined_call_operand.vmem [shape: bf16[32,32], index: 7, kind: input, shape index: {}]   ;;  %s1762_s8 = inlined_call_operand.vmem [shape: f32[32,1], index: 8, kind: input, shape index: {}]   ;;  %s1763_s9 = inlined_call_operand.vmem [shape: bf16[32,32], index: 9, kind: input, shape index: {}]   ;;  %s1764_s10 = inlined_call_operand.vmem [shape: f32[32,1], index: 10, kind: input, shape index: {}]   ;;  %s1765_s11 = inlined_call_operand.vmem [shape: bf16[8,32], index: 11, kind: input, shape index: {}]   ;;  %s1766_s12 = inlined_call_operand.vmem [shape: f32[8,1], index: 12, kind: input, shape index: {}]   ;;  %s1767_s13 = inlined_call_operand.hbm [shape: f32[2,8,16], index: 13, kind: output, shape index: {}]  }
   0x1   :  { %1769 = sst [smem:[#allocation6_spill]] %s1754_s0 }
   0x2   :  { %1770 = sst [smem:[#allocation7_spill]] %s1755_s1 }
   0x3   :  { %1771 = sst [smem:[#allocation8_spill]] %s1756_s2 }
   0x4   :  { %18 = vsyncpa [#allocation3], 0 }
   0x5   :  { %20 = vsyncpa [#allocation3 + $0x1], 0  ;;  %s1530_s25 = smov 0   ;;  %s1532_s26 = smov 0  }
   0x6   :  { %s1534_s27 = smov 0   ;;  %s1536_s28 = smov 0  }
   0x7   :  { %s1538_s29 = smov 0   ;;  %s1540_s30 = smov 0  }
   0x8 LB: > { %s1159_s14 = sadd.s32 4294967295, %s1451_s30   ;;  %s1160_s15 = sadd.s32 4294967294, %s1451_s30   ;;  %s1451_s30 = sphi %s1540_s30, %s26_s30   ;;  %s1447_s29 = sphi %s1538_s29, %s1783_s29   ;;  %s1443_s28 = sphi %s1536_s28, %s1782_s28   ;;  %s1439_s27 = sphi %s1534_s27, %s1781_s27   ;;  %s1435_s26 = sphi %s1532_s26, %s1780_s26   ;;  %s1431_s25 = sphi %s1530_s25, %s1779_s25  }
   0x9   : > { %s38_s16 = sadd.s32 1, %s1447_s29  ;;  %s327_s17 = sadd.s32 1, %s1439_s27 }
   0xa   : > { %p40_p0 = scmp.ge.s32.totalorder %s38_s16, 2  ;;  %p337_p1 = scmp.ne.s32.totalorder %s1439_s27, %s1435_s26 }
   0xb   : > { %p338_p2 = scmp.eq.s32.totalorder %s1159_s14, 1  ;;  %p343_p3 = scmp.ne.s32.totalorder %s1435_s26, %s1431_s25 }
   0xc   : > { %s1785_s16 = smov (%p40_p0, %s38_s16), 0  ;;  %p344_p5 = scmp.eq.s32.totalorder %s1160_s15, 1 }
   0xd   : > { %1772 = sst [smem:[#allocation5_spill]] %s1785_s16  ;;  %p1570_p4 = por %p338_p2, %p337_p1 }
   0xe   : > { %s322_s19 = ssub.s32 %s1447_s29, %s1785_s16  ;;  %p1163_p6 = scmp.ge.s32.totalorder %s1451_s30, 1 }
   0xf   : > { %p325_p7 = scmp.eq.s32.totalorder %s322_s19, 0  ;;  %p1577_p8 = por %p344_p5, %p343_p3 }
  0x10   : > { %p408_p9 = scmp.lt.s32.totalorder %s1451_s30, 3 }
  0x11   : > { %s1583_s21 = scalar_select %p325_p7, %s1439_s27, %s327_s17  }
  0x12   : > { %p409_p10 = pnand %p1163_p6, %p408_p9 }
  0x13   : > { %s1775_s2 = sld [smem:[#allocation8_spill]] (!%p409_p10)  ;;  %p454_p11 = scmp.lt.s32.totalorder (!%p409_p10), %s1443_s28, 1 }
  0x14   : > { %412 = sbr.rel (%p409_p10) target bundleno = 1248 (0x4e0), region = 72  ;;  %s1776_s1 = sld [smem:[#allocation7_spill]] (!%p409_p10) }
  0x15   : > { %s1777_s0 = sld [smem:[#allocation6_spill]] (!%p409_p10)  ;;  %s1184_s19 = sshll.u32 (!%p409_p10), %s1443_s28, 7 }
  0x16   : > { %s1708_s24 = scalar_lea.hbm (!%p409_p10), %s1767_s13, %s1184_s19 }
  0x19   : > { %v474_v0 = vld [vmem:[%s1775_s2 + $0x18] sm:$0xff]  ;;  %v1453_v2 = vmov 0   ;;  %v1454_v9 = vmov 1   ;;  %v473_v10 = vld [vmem:[%s1775_s2 + $0x10] sm:$0xff]  ;;  %v1455_v12 = vmov 2   ;;  %v472_v13 = vld [vmem:[%s1775_s2 + $0x8] sm:$0xff]  ;;  %v495_v34 = vlaneseq }
  0x1a   : > { %v1195_v1 = vld [vmem:[%s1776_s1 + $0x8] sm:$0xff]   ;;  %1322 = vset.pattern.permute.xlu1 %v1453_v2  ;;  %1316 = vset.pattern.permute.xlu0 %v1453_v2  ;;  %v1188_v5 = vld [vmem:[%s1776_s1] sm:$0xff]   ;;  %v1456_v15 = vmov 3   ;;  %vm655_vm0 = vcmask 261120   ;;  %v623_v17 = vld [vmem:[%s1758_s4 + $0x10] sm:$0xff]  ;;  %s455_s1 = scalar_select %p454_p11, %s1443_s28, 1 }
  0x1b   : > { %v1193_v3 = vunpack.c.l.bf16 %v1195_v1  ;;  %v1194_v4 = vunpack.c.h.bf16 %v1195_v1  ;;  %520 = vperm.xlu1 %1322, %v474_v0   ;;  %v1189_v7 = vunpack.c.l.bf16 %v1188_v5  ;;  %v1190_v8 = vunpack.c.h.bf16 %v1188_v5  ;;  %v471_v14 = vld [vmem:[%s1775_s2] sm:$0xff]  ;;  %v624_v18 = vld [vmem:[%s1758_s4 + $0x18] sm:$0xff]  ;;  %v622_v21 = vld [vmem:[%s1758_s4 + $0x8] sm:$0xff] }
  0x1c   : > { %v1367_v16 = vld [vmem:[%s1757_s3] sm:$0xff]   ;;  %v724_v20 = vld [vmem:[%s1760_s6 + $0x18] sm:$0xff]  ;;  %v722_v22 = vld [vmem:[%s1760_s6 + $0x8] sm:$0xff]  ;;  %s1165_s15 = sshll.u32 %s455_s1, 2  ;;  %v496_v35 = vshrl.u32 %v495_v34, 7  ;;  %vm1458_vm1 = vmmov 0  }
  0x1d   : > { %v1317_v6 = vpack.i.bf16 %v1194_v4, %v1193_v3  ;;  %v1329_v11 = vpack.i.bf16 %v1190_v8, %v1189_v7  ;;  %1219 = vmatprep.mubr.msk.bf16.mxu0 %vm655_vm0, %v1367_v16  ;;  %v621_v19 = vld [vmem:[%s1758_s4] sm:$0xff]  ;;  %v723_v23 = vld [vmem:[%s1760_s6 + $0x10] sm:$0xff]  ;;  %v827_v24 = vld [vmem:[%s1762_s8 + $0x18] sm:$0xff]  ;;  %s460_s16 = scalar_lea.vmem %s1777_s0, %s1165_s15  ;;  %s451_s15 = sand.u32 1, %s1435_s26  }
  0x1e   : > { %v721_v25 = vld [vmem:[%s1760_s6] sm:$0xff]  ;;  %v825_v26 = vld [vmem:[%s1762_s8 + $0x8] sm:$0xff]  ;;  %v826_v27 = vld [vmem:[%s1762_s8 + $0x10] sm:$0xff]  ;;  %v497_v37 = vsub.s32 0, %v496_v35  ;;  %v545_v43 = vsub.s32 1, %v496_v35  ;;  %v573_v46 = vsub.s32 2, %v496_v35 }
  0x1f   : > { %1318 = vperm.xlu0 %1316, %v1317_v6   ;;  %1323 = vset.pattern.permute.xlu1 %v1454_v9  ;;  %v926_v28 = vld [vmem:[%s1764_s10 + $0x18] sm:$0xff]  ;;  %v824_v29 = vld [vmem:[%s1762_s8] sm:$0xff]  ;;  %v924_v30 = vld [vmem:[%s1764_s10 + $0x8] sm:$0xff]  ;;  %v601_v61 = vsub.s32 3, %v496_v35  ;;  %s1164_s2 = sshll.u32 %s451_s15, 3  ;;  %s1074_s14 = scalar_lea.sflag [#allocation3], %s451_s15 }
  0x20   : > { %1325 = vperm.xlu1 %1323, %v1317_v6   ;;  %v925_v31 = vld [vmem:[%s1764_s10 + $0x10] sm:$0xff]  ;;  %v923_v32 = vld [vmem:[%s1764_s10] sm:$0xff]  ;;  %s1459_s1 = smov [#allocation2]  }
  0x21   : > { %v1023_v33 = vld [vmem:[%s1766_s12] sm:$0xff] }
  0x22   : > { %v462_v39 = vld [vmem:[%s460_s16] sm:$0xf]  ;;  %s453_s16 = scalar_lea.vmem [#allocation2], %s1164_s2  ;;  %s1379_s2 = sshll.u32 %s1459_s1, 4  ;;  %s1380_s2 = int_to_ptr.vmem [resolvable:$false] %s1379_s2 }
  0x23   : > { %515 = vperm.xlu0 %1316, %v473_v10   ;;  %v498_v42 = vrot.slane %v462_v39, %v497_v37  ;;  %v546_v50 = vrot.slane %v462_v39, %v545_v43  ;;  %v574_v56 = vrot.slane %v462_v39, %v573_v46  ;;  %v602_v4 = vrot.slane %v462_v39, %v601_v61  ;;  %s1088_s17 = sshll.u32 %s453_s16, 4  ;;  %s1381_s22 = scalar_lea.vmem %s1380_s2, 256  ;;  %s1710_s17 = int_to_ptr.vmem [resolvable:$true] %s1088_s17 }
  0x24   : > { %1334 = vset.pattern.permute.xlu1 %v1455_v12  ;;  %s1375_s28 = scalar_lea.vmem %s1710_s17, 128  ;;  %p1382_p1 = scmp.lt.s32.totalorder %s1710_s17, %s1380_s2 }
  0x25   : > { %1336 = vperm.xlu1 %1334, %v1317_v6   ;;  %p1376_p12 = scmp.ne.s32.totalorder %s1710_s17, %s1375_s28  ;;  %p1383_p2 = scmp.lt.s32.totalorder %s1381_s22, %s1375_s28 }
  0x27   : > { %1330 = vperm.xlu0 %1316, %v1329_v11   ;;  %p1377_p13 = pnand %p1376_p12, %p1570_p4  ;;  %p1384_p3 = por %p1383_p2, %p1382_p1 }
  0x29   : > { %1340 = vset.pattern.permute.xlu1 %v1453_v2  ;;  %p1378_p0 = pneg %p1377_p13 }
  0x2a   : > { %510 = vperm.xlu1 %1340, %v472_v13  }
  0x2b   : > { %505 = vperm.xlu0 %1316, %v471_v14   ;;  %p1385_p5 = pnand %p1384_p3, %p1378_p0 }
  0x2e   : > { %1347 = vset.pattern.permute.xlu1 %v1456_v15 }
  0x2f   : > { %1341 = vset.pattern.permute.xlu0 %v1454_v9  ;;  %1349 = vperm.xlu1 %1347, %v1317_v6  }
  0x30   : > { %1343 = vperm.xlu0 %1341, %v1329_v11  }
  0x33   : > { %1353 = vset.pattern.permute.xlu1 %v1455_v12 }
  0x34   : > { %1359 = vset.pattern.permute.xlu0 %v1456_v15  ;;  %1355 = vperm.xlu1 %1353, %v1329_v11  }
  0x35   : > { %1361 = vperm.xlu0 %1359, %v1329_v11  }
  0x38   : > { %1365 = vset.pattern.permute.xlu1 %v1453_v2 }
  0x39   : > { %1366 = vset.pattern.permute.xlu0 %v1453_v2  ;;  %637 = vperm.xlu1 %1365, %v623_v17  }
  0x3a   : > { %627 = vperm.xlu0 %1366, %v621_v19  }
  0x3d   : > { %642 = vperm.xlu1 %1365, %v624_v18  }
  0x3e   : > { %742 = vperm.xlu0 %1366, %v724_v20  }
  0x41   : > { %632 = vperm.xlu1 %1365, %v622_v21  }
  0x42   : > { %732 = vperm.xlu0 %1366, %v722_v22  }
  0x45   : > { %737 = vperm.xlu1 %1365, %v723_v23  }
  0x46   : > { %845 = vperm.xlu0 %1366, %v827_v24  }
  0x49   : > { %727 = vperm.xlu1 %1365, %v721_v25  }
  0x4a   : > { %835 = vperm.xlu0 %1366, %v825_v26  }
  0x4d   : > { %840 = vperm.xlu1 %1365, %v826_v27  }
  0x4e   : > { %944 = vperm.xlu0 %1366, %v926_v28  }
  0x51   : > { %830 = vperm.xlu1 %1365, %v824_v29  }
  0x52   : > { %934 = vperm.xlu0 %1366, %v924_v30  }
  0x55   : > { %939 = vperm.xlu1 %1365, %v925_v31  }
  0x59   : > { %929 = vperm.xlu1 %1365, %v923_v32  }
  0x5d   : > { %1026 = vperm.xlu1 %1365, %v1023_v33  }
  0x96   : > { %v521_v36 = vpop.permute.xlu1 %520 }
  0x9a   : > { %v1319_v38 = vpop.permute.xlu0 %1318 }
  0x9b   : > { %v1326_v40 = vpop.permute.xlu1 %1325  ;;  %v1321_v41 = vunpack.i.h.bf16 %v1319_v38  ;;  %v1320_v45 = vunpack.i.l.bf16 %v1319_v38 }
  0x9c   : > { %v1327_v49 = vunpack.i.l.bf16 %v1326_v40  ;;  %v1328_v52 = vunpack.i.h.bf16 %v1326_v40 }
  0x9d   : > { %v502_v48 = vmul.f32 %v1321_v41, %v498_v42  ;;  %v501_v53 = vmul.f32 %v1320_v45, %v498_v42 }
  0x9e   : > { %v516_v44 = vpop.permute.xlu0 %515  ;;  %v549_v58 = vmul.f32 %v1327_v49, %v546_v50  ;;  %v550_v62 = vmul.f32 %v1328_v52, %v546_v50 }
  0x9f   : > { %v526_v57 = vadd.f32 %v521_v36, %v502_v48  ;;  %v525_v63 = vadd.f32 %v516_v44, %v501_v53  ;;  %v1369_v48 = vld [vmem:[%s1759_s5] sm:$0xff]  }
  0xa0   : > { %v1337_v47 = vpop.permute.xlu1 %1336  ;;  %1227 = vmatprep.mubr.msk.bf16.mxu1 %vm655_vm0, %v1369_v48  ;;  %v1457_v48 = vmov 0.0  }
  0xa1   : > { %v1339_v54 = vunpack.i.h.bf16 %v1337_v47  ;;  %v1338_v55 = vunpack.i.l.bf16 %v1337_v47  ;;  %v554_v5 = vadd.f32 %v550_v62, %v526_v57  ;;  %v553_v6 = vadd.f32 %v549_v58, %v525_v63  ;;  %v1368_v47 = vld [vmem:[%s1757_s3 + $0x8] sm:$0xff]  }
  0xa2   : > { %v1331_v51 = vpop.permute.xlu0 %1330 }
  0xa3   : > { %v1333_v0 = vunpack.i.h.bf16 %v1331_v51  ;;  %v1332_v1 = vunpack.i.l.bf16 %v1331_v51  ;;  %v577_v2 = vmul.f32 %v1338_v55, %v574_v56  ;;  %v578_v3 = vmul.f32 %v1339_v54, %v574_v56 }
  0xa5   : > { %v511_v59 = vpop.permute.xlu1 %510  ;;  %v500_v7 = vmul.f32 %v1333_v0, %v498_v42  ;;  %v499_v8 = vmul.f32 %v1332_v1, %v498_v42  ;;  %v581_v15 = vadd.f32 %v577_v2, %v553_v6  ;;  %v582_v16 = vadd.f32 %v578_v3, %v554_v5  ;;  %v1370_v3 = vld [vmem:[%s1759_s5 + $0x8] sm:$0xff]  }
  0xa6   : > { %v506_v60 = vpop.permute.xlu0 %505 }
  0xa7   : > { %v524_v21 = vadd.f32 %v511_v59, %v500_v7  ;;  %v523_v22 = vadd.f32 %v506_v60, %v499_v8 }
  0xaa   : > { %v1350_v9 = vpop.permute.xlu1 %1349 }
  0xab   : > { %v1344_v10 = vpop.permute.xlu0 %1343  ;;  %v1352_v11 = vunpack.i.h.bf16 %v1350_v9  ;;  %v1351_v12 = vunpack.i.l.bf16 %v1350_v9 }
  0xac   : > { %v1346_v13 = vunpack.i.h.bf16 %v1344_v10  ;;  %v1345_v14 = vunpack.i.l.bf16 %v1344_v10 }
  0xad   : > { %v605_v17 = vmul.f32 %v1351_v12, %v602_v4  ;;  %v606_v18 = vmul.f32 %v1352_v11, %v602_v4 }
  0xae   : > { %v547_v19 = vmul.f32 %v1345_v14, %v546_v50  ;;  %v548_v20 = vmul.f32 %v1346_v13, %v546_v50 }
  0xaf   : > { %v1356_v23 = vpop.permute.xlu1 %1355  ;;  %v1663_v25 = vadd.f32 %v605_v17, %v581_v15  ;;  %v1665_v26 = vadd.f32 %v606_v18, %v582_v16 }
  0xb0   : > { %v1362_v24 = vpop.permute.xlu0 %1361  ;;  %v1358_v27 = vunpack.i.h.bf16 %v1356_v23  ;;  %v1357_v28 = vunpack.i.l.bf16 %v1356_v23  ;;  %v551_v31 = vadd.f32 %v547_v19, %v523_v22  ;;  %v552_v32 = vadd.f32 %v548_v20, %v524_v21 }
  0xb1   : > { %v1364_v29 = vunpack.i.h.bf16 %v1362_v24  ;;  %v1363_v30 = vunpack.i.l.bf16 %v1362_v24  ;;  %v613_v33 = vmax.f32 %v1663_v25, 0.0  ;;  %v614_v34 = vmax.f32 %v1665_v26, 0.0 }
  0xb2   : > { %v575_v35 = vmul.f32 %v1357_v28, %v574_v56  ;;  %v576_v36 = vmul.f32 %v1358_v27, %v574_v56 }
  0xb3   : > { %v603_v37 = vmul.f32 %v1363_v30, %v602_v4  ;;  %v604_v38 = vmul.f32 %v1364_v29, %v602_v4  ;;  %v616_v39 = vpack.c.bf16 %v614_v34, %v613_v33  ;;  %v1371_v4 = vld [vmem:[%s1761_s7] sm:$0xff]  }
  0xb4   : > { %v579_v40 = vadd.f32 %v575_v35, %v551_v31  ;;  %v580_v41 = vadd.f32 %v576_v36, %v552_v32  ;;  %v638_v49 = vpop.permute.xlu1 %637 }
  0xb5   : > { %1215 = vmatprep.subr.bf16.mxu0 %v616_v39  ;;  %v628_v54 = vpop.permute.xlu0 %627 }
  0xb6   : > { %v607_v42 = vadd.f32 %v603_v37, %v579_v40  ;;  %v608_v43 = vadd.f32 %v604_v38, %v580_v41  ;;  %1216 = vmatpush3.bf16.msra.mxu0 %v616_v39 }
  0xb8   : > { %v611_v44 = vmax.f32 %v607_v42, 0.0  ;;  %v612_v45 = vmax.f32 %v608_v43, 0.0  ;;  %v643_v50 = vpop.permute.xlu1 %642 }
  0xb9   : > { %v743_v6 = vpop.permute.xlu0 %742 }
  0xba   : > { %v615_v46 = vpack.c.bf16 %v612_v45, %v611_v44 }
  0xbc   : > { %1217 = vmatprep.subr.bf16.mxu0 %v615_v46  ;;  %v633_v58 = vpop.permute.xlu1 %632 }
  0xbd   : > { %1218 = vmatpush3.bf16.msra.mxu0 %v615_v46  ;;  %v733_v15 = vpop.permute.xlu0 %732 }
  0xc0   : > { %1220 = vmatmul.mubr.msk.bf16.vlgmr.msra.gmra.mxu0 %vm655_vm0, %v1368_v47  ;;  %v738_v5 = vpop.permute.xlu1 %737  ;;  %v1374_v47 = vld [vmem:[%s1763_s9 + $0x8] sm:$0xff]  }
  0xc1   : > { %1235 = vmatprep.mubr.msk.bf16.mxu0 %vm655_vm0, %v1371_v4  ;;  %v846_v30 = vpop.permute.xlu0 %845 }
  0xc4   : > { %v728_v9 = vpop.permute.xlu1 %727 }
  0xc5   : > { %v836_v38 = vpop.permute.xlu0 %835 }
  0xc8   : > { %v841_v29 = vpop.permute.xlu1 %840 }
  0xcc   : > { %v831_v34 = vpop.permute.xlu1 %830 }
 0x180   : > { %v1221_v51 = vpop.f32.mrf.mxu0 }
 0x181   : > { %v705_v53 = vadd.f32 %v1221_v51, %v638_v49  ;;  %v940_v49 = vpop.permute.xlu1 %939 }
 0x182   : > { %v696_v52 = vpop.f32.mrf.mxu0 }
 0x183   : > { %v697_v56 = vadd.f32 %v696_v52, %v628_v54  ;;  %v713_v60 = vmax.f32 %v705_v53, 0.0 }
 0x184   : > { %v1222_v55 = vpop.f32.mrf.mxu0 }
 0x185   : > { %v708_v57 = vadd.f32 %v1222_v55, %v643_v50  ;;  %v711_v63 = vmax.f32 %v697_v56, 0.0  ;;  %v945_v50 = vpop.permute.xlu0 %944  ;;  %v930_v54 = vpop.permute.xlu1 %929 }
 0x186   : > { %v699_v59 = vpop.f32.mrf.mxu0 }
 0x187   : > { %v714_v61 = vmax.f32 %v708_v57, 0.0  ;;  %v700_v62 = vadd.f32 %v699_v59, %v633_v58 }
 0x189   : > { %v712_v0 = vmax.f32 %v700_v62, 0.0  ;;  %v716_v1 = vpack.c.bf16 %v714_v61, %v713_v60  ;;  %v935_v59 = vpop.permute.xlu0 %934 }
 0x18b   : > { %v715_v2 = vpack.c.bf16 %v712_v0, %v711_v63  ;;  %1223 = vmatprep.subr.bf16.mxu1 %v716_v1 }
 0x18c   : > { %1224 = vmatpush3.bf16.msra.mxu1 %v716_v1 }
 0x18d   : > { %1225 = vmatprep.subr.bf16.mxu1 %v715_v2 }
 0x190   : > { %1226 = vmatpush3.bf16.msra.mxu1 %v715_v2 }
 0x193   : > { %1228 = vmatmul.mubr.msk.bf16.vlgmr.msra.gmra.mxu1 %vm655_vm0, %v1370_v3 }
 0x253   : > { %v1229_v7 = vpop.f32.mrf.mxu1 }
 0x254   : > { %v804_v8 = vadd.f32 %v1229_v7, %v738_v5  ;;  %v1022_v7 = vld [vmem:[%s1765_s11] sm:$0xf] }
 0x255   : > { %v795_v10 = vpop.f32.mrf.mxu1 }
 0x256   : > { %v796_v11 = vadd.f32 %v795_v10, %v728_v9  ;;  %v812_v13 = vadd.f32 %v804_v8, %v1663_v25  ;;  %v1372_v25 = vld [vmem:[%s1761_s7 + $0x8] sm:$0xff]   ;;  %v1027_v8 = vpop.permute.xlu1 %1026 }
 0x257   : > { %v1230_v12 = vpop.f32.mrf.mxu1 }
 0x258   : > { %v807_v14 = vadd.f32 %v1230_v12, %v743_v6  ;;  %v810_v17 = vadd.f32 %v796_v11, %v607_v42  ;;  %v816_v20 = vmax.f32 %v812_v13, 0.0 }
 0x259   : > { %v798_v16 = vpop.f32.mrf.mxu1 }
 0x25a   : > { %v813_v18 = vadd.f32 %v807_v14, %v1665_v26  ;;  %v799_v19 = vadd.f32 %v798_v16, %v733_v15  ;;  %v814_v23 = vmax.f32 %v810_v17, 0.0  ;;  %v1373_v26 = vld [vmem:[%s1763_s9] sm:$0xff]  }
 0x25b   : > { %1243 = vmatprep.mubr.msk.bf16.mxu1 %vm655_vm0, %v1373_v26 }
 0x25c   : > { %v817_v21 = vmax.f32 %v813_v18, 0.0  ;;  %v811_v22 = vadd.f32 %v799_v19, %v608_v43 }
 0x25e   : > { %v815_v24 = vmax.f32 %v811_v22, 0.0  ;;  %v819_v27 = vpack.c.bf16 %v817_v21, %v816_v20 }
 0x260   : > { %1231 = vmatprep.subr.bf16.mxu0 %v819_v27  ;;  %v818_v28 = vpack.c.bf16 %v815_v24, %v814_v23 }
 0x261   : > { %1232 = vmatpush3.bf16.msra.mxu0 %v819_v27 }
 0x262   : > { %1233 = vmatprep.subr.bf16.mxu0 %v818_v28 }
 0x265   : > { %1234 = vmatpush3.bf16.msra.mxu0 %v818_v28 }
 0x266   : > { %1247 = vmatprep.subr.bf16.mxu0 %v1457_v48 }
 0x268   : > { %1236 = vmatmul.mubr.msk.bf16.vlgmr.msra.gmra.mxu0 %vm655_vm0, %v1372_v25 }
 0x269   : > { %1251 = vmatprep.mubr.msk.bf16.mxu0 %vm1458_vm1, %v1457_v48 }
 0x328   : > { %v1237_v31 = vpop.f32.mrf.mxu0 }
 0x329   : > { %v907_v33 = vadd.f32 %v1237_v31, %v841_v29 }
 0x32a   : > { %v898_v32 = vpop.f32.mrf.mxu0 }
 0x32b   : > { %v899_v36 = vadd.f32 %v898_v32, %v831_v34  ;;  %v915_v40 = vmax.f32 %v907_v33, 0.0 }
 0x32c   : > { %v1238_v35 = vpop.f32.mrf.mxu0 }
 0x32d   : > { %v910_v37 = vadd.f32 %v1238_v35, %v846_v30  ;;  %v913_v43 = vmax.f32 %v899_v36, 0.0 }
 0x32e   : > { %v901_v39 = vpop.f32.mrf.mxu0 }
 0x32f   : > { %v916_v41 = vmax.f32 %v910_v37, 0.0  ;;  %v902_v42 = vadd.f32 %v901_v39, %v836_v38 }
 0x331   : > { %v918_v44 = vpack.c.bf16 %v916_v41, %v915_v40  ;;  %v914_v45 = vmax.f32 %v902_v42, 0.0 }
 0x333   : > { %v917_v46 = vpack.c.bf16 %v914_v45, %v913_v43  ;;  %1239 = vmatprep.subr.bf16.mxu1 %v918_v44 }
 0x334   : > { %1240 = vmatpush3.bf16.msra.mxu1 %v918_v44 }
 0x335   : > { %1241 = vmatprep.subr.bf16.mxu1 %v917_v46 }
 0x338   : > { %1242 = vmatpush3.bf16.msra.mxu1 %v917_v46 }
 0x33b   : > { %1244 = vmatmul.mubr.msk.bf16.vlgmr.msra.gmra.mxu1 %vm655_vm0, %v1374_v47 }
 0x3fb   : > { %v1245_v51 = vpop.f32.mrf.mxu1 }
 0x3fc   : > { %v1006_v52 = vadd.f32 %v1245_v51, %v940_v49 }
 0x3fd   : > { %v997_v53 = vpop.f32.mrf.mxu1 }
 0x3fe   : > { %v1014_v56 = vadd.f32 %v1006_v52, %v812_v13  ;;  %v998_v57 = vadd.f32 %v997_v53, %v930_v54 }
 0x3ff   : > { %v1246_v55 = vpop.f32.mrf.mxu1 }
 0x400   : > { %v1009_v58 = vadd.f32 %v1246_v55, %v945_v50  ;;  %v1018_v63 = vmax.f32 %v1014_v56, 0.0  ;;  %v1012_v0 = vadd.f32 %v998_v57, %v810_v17 }
 0x401   : > { %v1000_v60 = vpop.f32.mrf.mxu1 }
 0x402   : > { %v1015_v61 = vadd.f32 %v1009_v58, %v813_v18  ;;  %v1001_v62 = vadd.f32 %v1000_v60, %v935_v59  ;;  %v1016_v5 = vmax.f32 %v1012_v0, 0.0 }
 0x404   : > { %v1019_v1 = vmax.f32 %v1015_v61, 0.0  ;;  %v1013_v2 = vadd.f32 %v1001_v62, %v811_v22 }
 0x406   : > { %v1021_v3 = vpack.c.bf16 %v1019_v1, %v1018_v63  ;;  %v1017_v4 = vmax.f32 %v1013_v2, 0.0 }
 0x408   : > { %1248 = vmatpush3.bf16.msra.mxu0 %v1021_v3  ;;  %v1020_v6 = vpack.c.bf16 %v1017_v4, %v1016_v5 }
 0x409   : > { %1249 = vmatprep.subr.bf16.mxu0 %v1457_v48 }
 0x40c   : > { %1250 = vmatpush3.bf16.msra.mxu0 %v1020_v6 }
 0x40f   : > { %1252 = vmatmul.mubr.msk.bf16.vlgmr.msra.gmra.mxu0 %vm655_vm0, %v1022_v7 }
 0x4cf   : > { %v1066_v9 = vpop.f32.mrf.mxu0 }
 0x4d0   : > { %v1067_v10 = vadd.f32 %v1066_v9, %v1027_v8 }
 0x4d1   : > { %v1253_v11 = vpop.f32.mrf.mxu0 }
 0x4d2   : > { %1072 = vst [vmem:[%s453_s16] sm:$0xff] %v1067_v10 }
 0x4d3   : > { %v1069_v12 = vpop.f32.mrf.mxu0 }
 0x4d4   : > { %1388 = shalt.err (!%p1385_p5)
}
 0x4d5   : > { %s1389_s19 = scalar_lea.hbm %s1708_s24, 128  ;;  %s1393_s23 = scalar_lea.hbm %s1767_s13, 256 }
 0x4d6   : > { %p1390_p6 = scmp.ne.s32.totalorder %s1708_s24, %s1389_s19  ;;  %p1394_p10 = scmp.lt.s32.totalorder %s1708_s24, %s1767_s13 }
 0x4d7   : > { %p1395_p11 = scmp.lt.s32.totalorder %s1393_s23, %s1389_s19 }
 0x4d8   : > { %p1391_p7 = pnand %p1390_p6, %p1570_p4 }
 0x4d9   : > { %p1396_p12 = por %p1395_p11, %p1394_p10 }
 0x4da   : > { %p1392_p9 = pneg %p1391_p7 }
 0x4dc   : > { %p1397_p13 = pnand %p1396_p12, %p1392_p9 }
 0x4de   : > { %1400 = shalt.err (!%p1397_p13)
}
 0x4df   : > { %1255 = dma.vmem_to_hbm [thread:$0]  (%p1570_p4), %s1710_s17, 128, %s1708_s24, %s1074_s14   ;;  %v1254_v13 = vpop.f32.mrf.mxu0 }
 0x4e0 PF: > { %p1261_p0 = scmp.ge.s32.totalorder %s1451_s30, 2  ;;  %s1100_s28 = sand.u32 1, %s1431_s25  }
 0x4e1   : > { %s1101_s0 = scalar_lea.sflag [#allocation3], %s1100_s28 }
 0x4e2   : > { %p1258_p1 = pnand %p1261_p0, %p1577_p8 }
 0x4e4   : > { %p1259_p2 = pneg %p1258_p1 }
 0x4e6   : > { %1426 = dma.done.wait (%p1259_p2), %s1101_s0, 128  }
 0x4e7   : > { %1428 = vsyncadd (%p1259_p2), %s1101_s0, 4294967168  ;;  %s26_s30 = sadd.s32 1, %s1451_s30   ;;  %s1778_s18 = sld [smem:[#allocation5_spill]] }
 0x4e8   : > { %p23_p3 = scmp.ge.s32.totalorder %s26_s30, 4   ;;  %s1779_s25 = smov %s1435_s26 }
 0x4e9   : > { %s1780_s26 = smov %s1439_s27  ;;  %s1781_s27 = smov %s1583_s21 }
 0x4ea   : > { %s1782_s28 = smov %s1447_s29  ;;  %25 = sbr.rel (!%p23_p3) target bundleno = 8 (0x8), region = 107 }
 0x4ed   : > { %s1783_s29 = smov %s1778_s18 }
 0x4ef   :  { %1106 = vsyncpa [#allocation3], 1 }
 0x4f0   :  { %1108 = vsyncpa [#allocation3 + $0x1], 1 }

</bundles_post_ra>
